<compile_context>
chip_gen: v5e
topology: v5e:2x2
jax: 0.10.0
libtpu: 0.0.40
codegen_flags: <defaults>
</compile_context>

<pallas_src>
import functools
import math

import jax
import jax.numpy as jnp
import numpy as np
from jax.experimental import pallas as pl
from jax.experimental.pallas import tpu as pltpu  # noqa: F401  (TPU backend)


def _round_up(x, m):
    return ((x + m - 1) // m) * m


def _gcn_kernel(x_ref, wbig_ref, mix_ref, bias_ref, out_ref):
    # x_ref    : (BTp, K1p)  bf16  activations, rows=(b,t), cols=(c,n), zero lane-pad
    # wbig_ref : (BTp, BTp)  bf16  kron(I_B, Wt.T)   (block-diag temporal mix)
    # mix_ref  : (K1p, K2p)  bf16  kron(Wf, Ws.T)    (batch-independent feat+spatial mix)
    # bias_ref : (BTp, 1)    f32   bias[t] tiled over batch, broadcast along lanes
    # out_ref  : (BTp, K2p)  f32   rows=(b,t'), cols=(o,m)  (128-aligned lane slab)

    # Step 1 (temporal, one MXU matmul, f32 accumulation):
    #   Z[(b,t'), (c,n)] = sum_t Wt[t,t'] * x[b,c,n,t]
    z = jnp.dot(wbig_ref[...], x_ref[...], preferred_element_type=jnp.float32)

    # Step 2 (feature + spatial fused, one MXU matmul):
    #   Y[(b,t'), (o,m)] = sum_{c,n} Z[(b,t'),(c,n)] * Wf[c,o] * Ws[m,n]
    y = jnp.dot(z.astype(jnp.bfloat16), mix_ref[...],
                preferred_element_type=jnp.float32)

    # Single bias broadcast + single unmasked (256-lane) store.
    out_ref[...] = (y + bias_ref[...]).astype(out_ref.dtype)


def precompute_gcn_params(w_temporal, w_feature, w_spatial, bias, batch):
    """Weight-only preprocessing.  Run ONCE when the weights change (hoisted out
    of the per-forward hot path); the results are reusable constants."""
    T = w_temporal.shape[0]
    C, O = w_feature.shape
    N = w_spatial.shape[0]
    BT, K1, K2 = batch * T, C * N, O * N
    BTp = _round_up(BT, 8)          # sublane alignment
    K1p = _round_up(K1, 128)        # lane alignment (contraction dim of matmul 2)
    K2p = _round_up(K2, 128)        # lane alignment (output lanes)

    # Temporal mixing folded over the (b, t) sublane dim: block-diag of Wt.T.
    # (This is the only kron that touches B; it is (B*T)^2, tiny, and replaces the
    #  previous (C*B*N)x(O*B*N) mix whose I_B zeros scaled as B^2.)
    wbig = jnp.kron(jnp.eye(batch, dtype=w_temporal.dtype), w_temporal.T)
    wbig = jnp.pad(wbig, ((0, BTp - BT), (0, BTp - BT))).astype(jnp.bfloat16)

    # Batch-independent feature + spatial mix: Mix[(c,n),(o,m)] = Wf[c,o] * Ws[m,n].
    mix = jnp.kron(w_feature, w_spatial.T)
    mix = jnp.pad(mix, ((0, K1p - K1), (0, K2p - K2))).astype(jnp.bfloat16)

    # Bias as a (BTp, 1) column (broadcast along lanes inside the kernel), f32.
    bias_col = jnp.tile(bias, batch)[:, None]
    bias_col = jnp.pad(bias_col, ((0, BTp - BT), (0, 0))).astype(jnp.float32)

    dims = (batch, C, O, N, T, BTp, K1p, K2p)
    return wbig, mix, bias_col, dims


@functools.partial(jax.jit, static_argnames=("dims",))
def graph_convolution_forward(x, wbig, mix, bias_col, dims):
    """x: (B, C_in, N, T) float32 -> (B, C_out, N, T) float32."""
    B, C, O, N, T, BTp, K1p, K2p = dims

    # Data layout: (B, C, N, T) -> rows (b, t), cols (c, n); zero-pad lanes to 128.
    x2 = jnp.transpose(x, (0, 3, 1, 2)).reshape(B * T, C * N)
    x2 = jnp.pad(x2, ((0, BTp - B * T), (0, K1p - C * N))).astype(jnp.bfloat16)

    # Single gridless kernel invocation — everything fits comfortably in VMEM.
    y2 = pl.pallas_call(
        _gcn_kernel,
        out_shape=jax.ShapeDtypeStruct((BTp, K2p), x.dtype),
    )(x2, wbig, mix, bias_col)

    # Drop padding, (B*T, O*N) -> (B, T, O, N) -> (B, O, N, T)  (free layout plumbing).
    y2 = y2[: B * T, : O * N].reshape(B, T, O, N)
    return jnp.transpose(y2, (0, 2, 3, 1))


def _reference(x, wt, wf, ws, bias):
    """Pure-JAX transcription of the PyTorch forward (for verification)."""
    y = jnp.matmul(x, wt)                                # (B, C, N, T)
    y = jnp.matmul(jnp.transpose(y, (0, 3, 2, 1)), wf)   # (B, T, N, O)
    y = jnp.matmul(ws, y)                                # (B, T, N, O)
    y = jnp.transpose(y, (0, 3, 2, 1))                   # (B, O, N, T)
    return y + bias


if __name__ == "__main__":
    # Module defaults: node_n=21, seq_len=40; small feature dims.
    B, C_in, C_out, N, T = 2, 4, 8, 21, 40

    key = jax.random.PRNGKey(0)
    k_wt, k_wf, k_ws, k_b, k_x = jax.random.split(key, 5)

    # Deterministic "reset_parameters": uniform(-stdv, stdv), stdv = 1/sqrt(node_n)
    stdv = 1.0 / math.sqrt(N)
    w_temporal = jax.random.uniform(k_wt, (T, T), jnp.float32, -stdv, stdv)
    w_feature = jax.random.uniform(k_wf, (C_in, C_out), jnp.float32, -stdv, stdv)
    w_spatial = jax.random.uniform(k_ws, (N, N), jnp.float32, -stdv, stdv)
    bias = jax.random.uniform(k_b, (T,), jnp.float32, -stdv, stdv)

    x = jax.random.normal(k_x, (B, C_in, N, T), jnp.float32)

    # Weight-only prep (krons / padding / bf16) done once, outside the hot path.
    wbig, mix, bias_col, dims = precompute_gcn_params(
        w_temporal, w_feature, w_spatial, bias, B)

    out = graph_convolution_forward(x, wbig, mix, bias_col, dims)
    out = jax.block_until_ready(out)

    ref = _reference(x, w_temporal, w_feature, w_spatial, bias)
    # bf16 MXU operands with f32 accumulation -> loosened tolerance (per review).
    np.testing.assert_allclose(np.asarray(out), np.asarray(ref), rtol=2e-2, atol=2e-2)

    print("KERNEL_OK")
</pallas_src>

<mosaic_0001>
module attributes {stable_mosaic.version = 11 : i64} {
  func.func @_gcn_kernel(%arg0: memref<80x128xbf16, #tpu.memory_space<vmem>>, %arg1: memref<80x80xbf16, #tpu.memory_space<vmem>>, %arg2: memref<128x256xbf16, #tpu.memory_space<vmem>>, %arg3: memref<80x1xf32, #tpu.memory_space<vmem>>, %arg4: memref<80x256xf32, #tpu.memory_space<vmem>>) attributes {dimension_semantics = [], scalar_prefetch = 0 : i64, scratch_operands = 0 : i64, tpu.core_type = #tpu.core_type<tc>} {
    %c0 = arith.constant 0 : index
    %c0_0 = arith.constant 0 : index
    %0 = vector.load %arg1[%c0, %c0_0] : memref<80x80xbf16, #tpu.memory_space<vmem>>, vector<80x80xbf16>
    %c0_1 = arith.constant 0 : index
    %c0_2 = arith.constant 0 : index
    %1 = vector.load %arg0[%c0_1, %c0_2] : memref<80x128xbf16, #tpu.memory_space<vmem>>, vector<80x128xbf16>
    %cst = arith.constant dense<0.000000e+00> : vector<80x128xf32>
    %2 = tpu.matmul %0, %1, %cst {dimension_numbers = #tpu.dot_dimension_numbers<[1], [0], [0], [1], [0, 0, 1, 1], [], []>} : vector<80x80xbf16>, vector<80x128xbf16>, vector<80x128xf32> -> vector<80x128xf32>
    %3 = arith.truncf %2 : vector<80x128xf32> to vector<80x128xbf16>
    %c0_3 = arith.constant 0 : index
    %c0_4 = arith.constant 0 : index
    %4 = vector.load %arg2[%c0_3, %c0_4] : memref<128x256xbf16, #tpu.memory_space<vmem>>, vector<128x256xbf16>
    %cst_5 = arith.constant dense<0.000000e+00> : vector<80x256xf32>
    %5 = tpu.matmul %3, %4, %cst_5 {dimension_numbers = #tpu.dot_dimension_numbers<[1], [0], [0], [1], [0, 0, 1, 1], [], []>} : vector<80x128xbf16>, vector<128x256xbf16>, vector<80x256xf32> -> vector<80x256xf32>
    %c0_6 = arith.constant 0 : index
    %c0_7 = arith.constant 0 : index
    %6 = vector.load %arg3[%c0_6, %c0_7] : memref<80x1xf32, #tpu.memory_space<vmem>>, vector<80x1xf32>
    %7 = vector.broadcast %6 : vector<80x1xf32> to vector<80x256xf32>
    %8 = arith.addf %5, %7 : vector<80x256xf32>
    %c0_8 = arith.constant 0 : index
    %c0_9 = arith.constant 0 : index
    %9 = vector.load %arg4[%c0_8, %c0_9] : memref<80x256xf32, #tpu.memory_space<vmem>>, vector<80x256xf32>
    tpu.vector_store %arg4[%c0_8, %c0_9], %8 {strides = array<i32>} : memref<80x256xf32, #tpu.memory_space<vmem>>, vector<80x256xf32>,
    return
  }
}

</mosaic_0001>

<bundles_post_ra>
// kernel: graph_convolution_forward.1
= control target key start
LH: loop header
LB: loop body
LE: loop exit
PB: predicated region body
PF: predicated region fallthrough
CT: control target
= control target key end

     0   :  { %vm93_vm0 = vcmask 654336   ;;  %v551_v56 = vmov 0   ;;  %s798_s0 = inlined_call_operand.vmem [shape: bf16[80,128], index: 0, kind: input, shape index: {}]   ;;  %s799_s1 = inlined_call_operand.vmem [shape: bf16[80,80], index: 1, kind: input, shape index: {}]   ;;  %s800_s2 = inlined_call_operand.vmem [shape: bf16[128,256], index: 2, kind: input, shape index: {}]   ;;  %s801_s3 = inlined_call_operand.vmem [shape: f32[80,1], index: 3, kind: input, shape index: {}]   ;;  %s802_s4 = inlined_call_operand.vmem [shape: f32[80,256], index: 4, kind: output, shape index: {}]  }
   0x1   :  { %v514_v0 = vld [vmem:[%s798_s0 + $0x20] sm:$0xff]  ;;  %v513_v1 = vld [vmem:[%s798_s0 + $0x18] sm:$0xff]  ;;  %v512_v2 = vld [vmem:[%s798_s0 + $0x10] sm:$0xff]  ;;  %548 = vset.pattern.permute.xlu0 %v551_v56  ;;  %549 = vset.pattern.permute.xlu1 %v551_v56 }
   0x2   :  { %112 = vmatpush.bf16.msra.mxu0 %v514_v0  ;;  %v511_v3 = vld [vmem:[%s798_s0 + $0x8] sm:$0xff]  ;;  %v510_v4 = vld [vmem:[%s798_s0] sm:$0xff]  ;;  %v507_v7 = vld [vmem:[%s799_s1 + $0x10] sm:$0xff]  ;;  %550 = vset.pattern.permute.xlu2 %v551_v56 }
   0x3   :  { %v505_v5 = vld [vmem:[%s799_s1] sm:$0xff]  ;;  %v506_v6 = vld [vmem:[%s799_s1 + $0x8] sm:$0xff]  ;;  %v499_v8 = vld [vmem:[%s800_s2 + $0x70] sm:$0xf] }
   0x4   :  { %v530_v9 = vld [vmem:[%s800_s2 + $0x74] sm:$0xf0]  ;;  %v491_v10 = vld [vmem:[%s800_s2 + $0x60] sm:$0xf]  ;;  %v528_v12 = vld [vmem:[%s800_s2 + $0x64] sm:$0xf0] }
   0x5   :  { %v500_v11 = vor.u32 %v530_v9, %v499_v8  ;;  %v492_v13 = vor.u32 %v528_v12, %v491_v10  ;;  %v483_v14 = vld [vmem:[%s800_s2 + $0x50] sm:$0xf]  ;;  %v526_v15 = vld [vmem:[%s800_s2 + $0x54] sm:$0xf0]  ;;  %v529_v16 = vld [vmem:[%s800_s2 + $0x74] sm:$0xf] }
   0x6   :  { %113 = vmatpush.bf16.msra.mxu0 %v513_v1  ;;  %v501_v17 = vld [vmem:[%s800_s2 + $0x78] sm:$0xf0]  ;;  %v484_v19 = vor.u32 %v526_v15, %v483_v14  ;;  %v475_v20 = vld [vmem:[%s800_s2 + $0x40] sm:$0xf]  ;;  %v524_v21 = vld [vmem:[%s800_s2 + $0x44] sm:$0xf0] }
   0x7   :  { %304 = vmatpush.bf16.msra.mxu1 %v500_v11  ;;  %531 = vmatpush.bf16.msra.mxu3 %v500_v11  ;;  %v504_v18 = vor.u32 %v529_v16, %v501_v17  ;;  %v476_v22 = vor.u32 %v524_v21, %v475_v20  ;;  %v508_v23 = vld [vmem:[%s799_s1 + $0x18] sm:$0xff]  ;;  %v467_v24 = vld [vmem:[%s800_s2 + $0x30] sm:$0xf]  ;;  %v459_v27 = vld [vmem:[%s800_s2 + $0x20] sm:$0xf] }
   0x8   :  { %v522_v25 = vld [vmem:[%s800_s2 + $0x34] sm:$0xf0]  ;;  %v520_v28 = vld [vmem:[%s800_s2 + $0x24] sm:$0xf0]  ;;  %v451_v30 = vld [vmem:[%s800_s2 + $0x10] sm:$0xf] }
   0x9   :  { %539 = vmatpush.bf16.msra.mxu2 %v504_v18  ;;  %v468_v26 = vor.u32 %v522_v25, %v467_v24  ;;  %v460_v29 = vor.u32 %v520_v28, %v459_v27  ;;  %v518_v31 = vld [vmem:[%s800_s2 + $0x14] sm:$0xf0]  ;;  %v443_v33 = vld [vmem:[%s800_s2] sm:$0xf]  ;;  %v516_v34 = vld [vmem:[%s800_s2 + $0x4] sm:$0xf0] }
   0xa   :  { %114 = vmatpush.bf16.msra.mxu0 %v512_v2  ;;  %v452_v32 = vor.u32 %v518_v31, %v451_v30  ;;  %v444_v35 = vor.u32 %v516_v34, %v443_v33  ;;  %v509_v36 = vld [vmem:[%s799_s1 + $0x20] sm:$0xff]  ;;  %v493_v38 = vld [vmem:[%s800_s2 + $0x68] sm:$0xf0]  ;;  %v525_v40 = vld [vmem:[%s800_s2 + $0x54] sm:$0xf] }
   0xb   :  { %305 = vmatpush.bf16.msra.mxu1 %v492_v13  ;;  %532 = vmatpush.bf16.msra.mxu3 %v492_v13  ;;  %v527_v37 = vld [vmem:[%s800_s2 + $0x64] sm:$0xf]  ;;  %v485_v41 = vld [vmem:[%s800_s2 + $0x58] sm:$0xf0]  ;;  %v477_v44 = vld [vmem:[%s800_s2 + $0x48] sm:$0xf0] }
   0xc   :  { %v496_v39 = vor.u32 %v527_v37, %v493_v38  ;;  %v488_v42 = vor.u32 %v525_v40, %v485_v41  ;;  %v523_v43 = vld [vmem:[%s800_s2 + $0x44] sm:$0xf]  ;;  %v521_v46 = vld [vmem:[%s800_s2 + $0x34] sm:$0xf]  ;;  %v469_v47 = vld [vmem:[%s800_s2 + $0x38] sm:$0xf0] }
   0xd   :  { %v480_v45 = vor.u32 %v523_v43, %v477_v44  ;;  %v472_v48 = vor.u32 %v521_v46, %v469_v47  ;;  %v519_v49 = vld [vmem:[%s800_s2 + $0x24] sm:$0xf]  ;;  %v461_v50 = vld [vmem:[%s800_s2 + $0x28] sm:$0xf0]  ;;  %v517_v52 = vld [vmem:[%s800_s2 + $0x14] sm:$0xf] }
   0xe   :  { %115 = vmatpush.bf16.msra.mxu0 %v511_v3  ;;  %540 = vmatpush.bf16.msra.mxu2 %v496_v39  ;;  %v464_v51 = vor.u32 %v519_v49, %v461_v50  ;;  %v453_v53 = vld [vmem:[%s800_s2 + $0x18] sm:$0xf0]  ;;  %v164_v54 = vld [vmem:[%s801_s3] sm:$0xff]  ;;  %v445_v58 = vld [vmem:[%s800_s2 + $0x8] sm:$0xf0] }
   0xf   :  { %306 = vmatpush.bf16.msra.mxu1 %v484_v19  ;;  %533 = vmatpush.bf16.msra.mxu3 %v484_v19  ;;  %v456_v55 = vor.u32 %v517_v52, %v453_v53  ;;  %v515_v57 = vld [vmem:[%s800_s2 + $0x4] sm:$0xf]  ;;  %v165_v60 = vld [vmem:[%s801_s3 + $0x8] sm:$0xff]  ;;  %v166_v0 = vld [vmem:[%s801_s3 + $0x10] sm:$0xff] }
  0x10   :  { %176 = vperm.xlu0 %548, %v164_v54   ;;  %v448_v59 = vor.u32 %v515_v57, %v445_v58  ;;  %186 = vperm.xlu1 %549, %v166_v0   ;;  %v167_v2 = vld [vmem:[%s801_s3 + $0x18] sm:$0xff]  ;;  %v173_v9 = vld [vmem:[%s801_s3 + $0x48] sm:$0xff]  ;;  %v168_v10 = vld [vmem:[%s801_s3 + $0x20] sm:$0xff] }
  0x11   :  { %v171_v11 = vld [vmem:[%s801_s3 + $0x38] sm:$0xff]  ;;  %196 = vperm.xlu2 %550, %v168_v10   ;;  %v169_v13 = vld [vmem:[%s801_s3 + $0x28] sm:$0xff]  ;;  %v172_v16 = vld [vmem:[%s801_s3 + $0x40] sm:$0xff] }
  0x12   :  { %116 = vmatpush.bf16.msra.mxu0 %v510_v4  ;;  %541 = vmatpush.bf16.msra.mxu2 %v488_v42 }
  0x13   :  { %307 = vmatpush.bf16.msra.mxu1 %v476_v22  ;;  %534 = vmatpush.bf16.msra.mxu3 %v476_v22 }
  0x15   :  { %436 = vmatmul.msk.bf16.vlgmr.msra.gmra.mxu0 %vm93_vm0, %v505_v5 }
  0x16   :  { %542 = vmatpush.bf16.msra.mxu2 %v480_v45 }
  0x17   :  { %308 = vmatpush.bf16.msra.mxu1 %v468_v26  ;;  %535 = vmatpush.bf16.msra.mxu3 %v468_v26 }
  0x18   :  { %181 = vperm.xlu0 %548, %v165_v60   ;;  %191 = vperm.xlu1 %549, %v167_v2  }
  0x19   :  { %201 = vperm.xlu2 %550, %v169_v13  }
  0x1a   :  { %543 = vmatpush.bf16.msra.mxu2 %v472_v48 }
  0x1b   :  { %309 = vmatpush.bf16.msra.mxu1 %v460_v29  ;;  %536 = vmatpush.bf16.msra.mxu3 %v460_v29 }
  0x1e   :  { %544 = vmatpush.bf16.msra.mxu2 %v464_v51 }
  0x1f   :  { %310 = vmatpush.bf16.msra.mxu1 %v452_v32  ;;  %537 = vmatpush.bf16.msra.mxu3 %v452_v32 }
  0x20   :  { %211 = vperm.xlu1 %549, %v171_v11  }
  0x21   :  { %216 = vperm.xlu2 %550, %v172_v16  }
  0x22   :  { %545 = vmatpush.bf16.msra.mxu2 %v456_v55 }
  0x23   :  { %311 = vmatpush.bf16.msra.mxu1 %v444_v35  ;;  %538 = vmatpush.bf16.msra.mxu3 %v444_v35 }
  0x25   :  { %437 = vmatmul.msk.bf16.gmra.mxu0 %vm93_vm0, %v506_v6  ;;  %v170_v6 = vld [vmem:[%s801_s3 + $0x30] sm:$0xff] }
  0x26   :  { %546 = vmatpush.bf16.msra.mxu2 %v448_v59  ;;  %206 = vperm.xlu0 %548, %v170_v6  }
  0x27   :  { %338 = vmatpush.bf16.msrb.mxu1 %v504_v18 }
  0x2b   :  { %339 = vmatpush.bf16.msrb.mxu1 %v496_v39 }
  0x2e   :  { %221 = vperm.xlu0 %548, %v173_v9  }
  0x2f   :  { %340 = vmatpush.bf16.msrb.mxu1 %v488_v42 }
  0x33   :  { %341 = vmatpush.bf16.msrb.mxu1 %v480_v45 }
  0x35   :  { %438 = vmatmul.msk.bf16.gmra.mxu0 %vm93_vm0, %v507_v7 }
  0x37   :  { %342 = vmatpush.bf16.msrb.mxu1 %v472_v48 }
  0x3b   :  { %343 = vmatpush.bf16.msrb.mxu1 %v464_v51 }
  0x3f   :  { %344 = vmatpush.bf16.msrb.mxu1 %v456_v55 }
  0x43   :  { %345 = vmatpush.bf16.msrb.mxu1 %v448_v59 }
  0x45   :  { %439 = vmatmul.msk.bf16.gmra.mxu0 %vm93_vm0, %v508_v23 }
  0x55   :  { %440 = vmatmul.msk.bf16.gmra.mxu0 %vm93_vm0, %v509_v36 }
  0x6b   :  { %v197_v40 = vpop.permute.xlu2 %196 }
  0x73   :  { %v202_v45 = vpop.permute.xlu2 %201 }
  0x7b   :  { %v217_v60 = vpop.permute.xlu2 %216 }
  0x82   :  { %v177_v20 = vpop.permute.xlu0 %176  ;;  %v187_v28 = vpop.permute.xlu1 %186 }
  0x8a   :  { %v182_v23 = vpop.permute.xlu0 %181  ;;  %v192_v35 = vpop.permute.xlu1 %191 }
  0x92   :  { %v118_v61 = vpop.f32.mrf.mxu0  ;;  %v212_v55 = vpop.permute.xlu1 %211 }
  0x98   :  { %v207_v50 = vpop.permute.xlu0 %206 }
  0x9a   :  { %v120_v62 = vpop.f32.mrf.mxu0 }
  0x9b   :  { %v143_v63 = vpack.c.bf16 %v120_v62, %v118_v61 }
  0x9d   :  { %312 = vmatmul.bf16.vlgmr.msra.gmra.mxu1 %v143_v63 }
  0xa2   :  { %v123_v1 = vpop.f32.mrf.mxu0 }
  0xaa   :  { %v125_v3 = vpop.f32.mrf.mxu0 }
  0xab   :  { %v144_v4 = vpack.c.bf16 %v125_v3, %v123_v1  ;;  %v222_v1 = vpop.permute.xlu0 %221 }
  0xad   :  { %317 = vmatmul.bf16.vlgmr.msra.gmra.mxu3 %v144_v4  ;;  %346 = vmatmul.bf16.vlgmr.msrb.gmra.mxu1 %v143_v63 }
  0xae   :  { %351 = vmatmul.bf16.vlgmr.msra.gmra.mxu2 %v144_v4 }
  0xb2   :  { %v128_v5 = vpop.f32.mrf.mxu0 }
  0xba   :  { %v130_v7 = vpop.f32.mrf.mxu0 }
  0xbb   :  { %v145_v8 = vpack.c.bf16 %v130_v7, %v128_v5 }
  0xbd   :  { %322 = vmatmul.bf16.gmra.mxu3 %v145_v8 }
  0xbe   :  { %356 = vmatmul.bf16.gmra.mxu2 %v145_v8 }
  0xc2   :  { %v133_v12 = vpop.f32.mrf.mxu0 }
  0xca   :  { %v135_v14 = vpop.f32.mrf.mxu0 }
  0xcb   :  { %v146_v15 = vpack.c.bf16 %v135_v14, %v133_v12 }
  0xcd   :  { %327 = vmatmul.bf16.gmra.mxu3 %v146_v15 }
  0xce   :  { %361 = vmatmul.bf16.gmra.mxu2 %v146_v15 }
  0xd2   :  { %v138_v17 = vpop.f32.mrf.mxu0 }
  0xda   :  { %v140_v18 = vpop.f32.mrf.mxu0 }
  0xdb   :  { %v147_v19 = vpack.c.bf16 %v140_v18, %v138_v17 }
  0xdd   :  { %332 = vmatmul.bf16.gmra.mxu3 %v147_v19 }
  0xde   :  { %366 = vmatmul.bf16.gmra.mxu2 %v147_v19 }
 0x11a   :  { %v313_v21 = vpop.f32.mrf.mxu1 }
 0x11b   :  { %v314_v22 = vadd.f32 %v313_v21, %v177_v20 }
 0x11d   :  { %372 = vst [vmem:[%s802_s4] sm:$0xff] %v314_v22 }
 0x122   :  { %v315_v24 = vpop.f32.mrf.mxu1 }
 0x123   :  { %v316_v25 = vadd.f32 %v315_v24, %v182_v23 }
 0x125   :  { %374 = vst [vmem:[%s802_s4 + $0x10] sm:$0xff] %v316_v25 }
 0x12a   :  { %v347_v26 = vpop.f32.mrf.mxu1 }
 0x12b   :  { %v348_v27 = vadd.f32 %v347_v26, %v177_v20 }
 0x12d   :  { %373 = vst [vmem:[%s802_s4 + $0x8] sm:$0xff] %v348_v27 }
 0x130   :  { %v318_v29 = vpop.f32.mrf.mxu3 }
 0x131   :  { %v319_v30 = vadd.f32 %v318_v29, %v187_v28  ;;  %v352_v31 = vpop.f32.mrf.mxu2 }
 0x132   :  { %v353_v32 = vadd.f32 %v352_v31, %v187_v28  ;;  %v349_v33 = vpop.f32.mrf.mxu1 }
 0x133   :  { %376 = vst [vmem:[%s802_s4 + $0x20] sm:$0xff] %v319_v30  ;;  %v350_v34 = vadd.f32 %v349_v33, %v182_v23 }
 0x134   :  { %377 = vst [vmem:[%s802_s4 + $0x28] sm:$0xff] %v353_v32 }
 0x135   :  { %375 = vst [vmem:[%s802_s4 + $0x18] sm:$0xff] %v350_v34 }
 0x138   :  { %v320_v36 = vpop.f32.mrf.mxu3 }
 0x139   :  { %v321_v37 = vadd.f32 %v320_v36, %v192_v35  ;;  %v354_v38 = vpop.f32.mrf.mxu2 }
 0x13a   :  { %v355_v39 = vadd.f32 %v354_v38, %v192_v35 }
 0x13b   :  { %378 = vst [vmem:[%s802_s4 + $0x30] sm:$0xff] %v321_v37 }
 0x13c   :  { %379 = vst [vmem:[%s802_s4 + $0x38] sm:$0xff] %v355_v39 }
 0x140   :  { %v323_v41 = vpop.f32.mrf.mxu3 }
 0x141   :  { %v324_v42 = vadd.f32 %v323_v41, %v197_v40  ;;  %v357_v43 = vpop.f32.mrf.mxu2 }
 0x142   :  { %v358_v44 = vadd.f32 %v357_v43, %v197_v40 }
 0x143   :  { %380 = vst [vmem:[%s802_s4 + $0x40] sm:$0xff] %v324_v42 }
 0x144   :  { %381 = vst [vmem:[%s802_s4 + $0x48] sm:$0xff] %v358_v44 }
 0x148   :  { %v325_v46 = vpop.f32.mrf.mxu3 }
 0x149   :  { %v326_v47 = vadd.f32 %v325_v46, %v202_v45  ;;  %v359_v48 = vpop.f32.mrf.mxu2 }
 0x14a   :  { %v360_v49 = vadd.f32 %v359_v48, %v202_v45 }
 0x14b   :  { %382 = vst [vmem:[%s802_s4 + $0x50] sm:$0xff] %v326_v47 }
 0x14c   :  { %383 = vst [vmem:[%s802_s4 + $0x58] sm:$0xff] %v360_v49 }
 0x150   :  { %v328_v51 = vpop.f32.mrf.mxu3 }
 0x151   :  { %v329_v52 = vadd.f32 %v328_v51, %v207_v50  ;;  %v362_v53 = vpop.f32.mrf.mxu2 }
 0x152   :  { %v363_v54 = vadd.f32 %v362_v53, %v207_v50 }
 0x153   :  { %384 = vst [vmem:[%s802_s4 + $0x60] sm:$0xff] %v329_v52 }
 0x154   :  { %385 = vst [vmem:[%s802_s4 + $0x68] sm:$0xff] %v363_v54 }
 0x158   :  { %v330_v56 = vpop.f32.mrf.mxu3 }
 0x159   :  { %v331_v57 = vadd.f32 %v330_v56, %v212_v55  ;;  %v364_v58 = vpop.f32.mrf.mxu2 }
 0x15a   :  { %v365_v59 = vadd.f32 %v364_v58, %v212_v55 }
 0x15b   :  { %386 = vst [vmem:[%s802_s4 + $0x70] sm:$0xff] %v331_v57 }
 0x15c   :  { %387 = vst [vmem:[%s802_s4 + $0x78] sm:$0xff] %v365_v59 }
 0x160   :  { %v333_v61 = vpop.f32.mrf.mxu3 }
 0x161   :  { %v334_v62 = vadd.f32 %v333_v61, %v217_v60  ;;  %v367_v63 = vpop.f32.mrf.mxu2 }
 0x162   :  { %v368_v0 = vadd.f32 %v367_v63, %v217_v60 }
 0x163   :  { %388 = vst [vmem:[%s802_s4 + $0x80] sm:$0xff] %v334_v62 }
 0x164   :  { %389 = vst [vmem:[%s802_s4 + $0x88] sm:$0xff] %v368_v0 }
 0x168   :  { %v335_v2 = vpop.f32.mrf.mxu3 }
 0x169   :  { %v336_v3 = vadd.f32 %v335_v2, %v222_v1  ;;  %v369_v4 = vpop.f32.mrf.mxu2 }
 0x16a   :  { %v370_v5 = vadd.f32 %v369_v4, %v222_v1 }
 0x16b   :  { %390 = vst [vmem:[%s802_s4 + $0x90] sm:$0xff] %v336_v3 }
 0x16c   :  { %391 = vst [vmem:[%s802_s4 + $0x98] sm:$0xff] %v370_v5 }

</bundles_post_ra>
